<compile_context>
chip_gen: v7x
topology: tpu7x:2x2x1
jax: 0.10.0
libtpu: 0.0.40
codegen_flags: <defaults>
</compile_context>

<pallas_src>
import jax
import jax.numpy as jnp
from jax.experimental import pallas as pl
from jax.experimental.pallas import tpu as pltpu

CONV_DIM = 70
OUT_ROWS = 8          # transposed output slab height: 2 real rows + 6 zero pad


def _round_up(x, m):
    return (x + m - 1) // m * m


def _make_similarity_kernel(m2, k_pad):
    feat_dim = 4 * m2 + CONV_DIM
    pad = k_pad - feat_dim

    def kernel(head_ref, body_ref, conv_ref, w1_ref, w2t_ref, bh_ref, bp_ref,
               out_ref):
        head = head_ref[...]                       # (TB, m2)  unpadded lanes
        body = body_ref[...]                       # (TB, m2)
        conv = conv_ref[...]                       # (TB, 70)

        # Angle & difference features (VPU, elementwise).
        diff = jnp.abs(body - head)
        ang = body * head

        # Assemble the fused feature row in VMEM only (never in HBM); zero
        # lanes [feat_dim:k_pad] hit zero rows of w1 so they contribute 0.
        pieces = [head, body, diff, ang, conv]
        if pad:
            pieces.append(jnp.zeros((head.shape[0], pad), jnp.float32))
        feat = jnp.concatenate(pieces, axis=-1)    # (TB, k_pad)

        # Hidden layer: one fused MXU pass over K = k_pad.
        h = jnp.dot(feat, w1_ref[...], preferred_element_type=jnp.float32)
        h = jax.nn.sigmoid(h + bh_ref[...])        # (TB, h_pad); pad lanes->0.5

        # Output layer, transposed: out^T = w2^T @ h^T -> (8, TB) lane-dense
        # slab.  Zero w2t columns beyond `hidden` neutralize the sigmoid(0)=0.5
        # pad lanes of h; zero w2t rows 2..7 keep the pad output rows at bias 0.
        out_t = jax.lax.dot_general(
            w2t_ref[...], h,
            dimension_numbers=(((1,), (1,)), ((), ())),
            preferred_element_type=jnp.float32)    # (8, TB)
        out_ref[...] = (out_t + bp_ref[...]).astype(out_ref.dtype)

    return kernel


def pack_similarity_params(params, mem_dim):
    """One-time host-side weight packing.  Do NOT call per forward pass."""
    m2 = 2 * mem_dim
    feat_dim = 4 * m2 + CONV_DIM                   # == 8*mem_dim + 70
    hidden = params["wh_w"].shape[1]

    k_pad = _round_up(feat_dim, 128)               # 326 -> 384 for mem_dim=32
    h_pad = _round_up(max(hidden, 128), 128)

    wh_w = jnp.asarray(params["wh_w"], jnp.float32)       # (feat_dim, hidden)
    wh_b = jnp.asarray(params["wh_b"], jnp.float32).reshape(-1)
    wp_w = jnp.asarray(params["wp_w"], jnp.float32)       # (hidden, 2)
    wp_b = jnp.asarray(params["wp_b"], jnp.float32).reshape(-1)

    # Fused wh weight, rows laid out in the kernel's concat order
    # [head|body|diff|ang|conv]; padded rows/cols are zero.
    w1 = jnp.zeros((k_pad, h_pad), jnp.float32)
    w1 = w1.at[:feat_dim, :hidden].set(wh_w)

    # Transposed wp weight: (8, h_pad); rows 0..1 real, rest zero.
    w2t = jnp.zeros((OUT_ROWS, h_pad), jnp.float32)
    w2t = w2t.at[:2, :hidden].set(wp_w.T)

    bh = jnp.zeros((1, h_pad), jnp.float32).at[0, :hidden].set(wh_b)
    bp = jnp.zeros((OUT_ROWS, 1), jnp.float32).at[:2, 0].set(wp_b)

    return {
        "w1": w1, "w2t": w2t, "bh": bh, "bp": bp,
        # raw copies for the tiny-batch XLA fast path
        "wh_w": wh_w, "wh_b": wh_b, "wp_w": wp_w, "wp_b": wp_b,
        "mem_dim": mem_dim, "m2": m2, "feat_dim": feat_dim,
        "k_pad": k_pad, "h_pad": h_pad,
    }


def _small_batch_forward(body, head, conv, packed):
    """Plain fused-XLA path for tiny batches (launch/DMA overhead dominates)."""
    diff = jnp.abs(body - head)
    ang = body * head
    feat = jnp.concatenate([head, body, diff, ang, conv], axis=-1)
    h = jax.nn.sigmoid(feat @ packed["wh_w"] + packed["wh_b"])
    return h @ packed["wp_w"] + packed["wp_b"]


def similarity_forward(body, head, conv, packed, *, block_b=1024,
                       min_pallas_batch=32):
    """Forward pass.  Accepts a single (body, head, conv) pair (flat vectors,
    PyTorch-module style) or a batch of B pairs given as (B, ...) rows."""
    m2 = packed["m2"]

    body = jnp.asarray(body, jnp.float32).reshape(-1, m2)
    head = jnp.asarray(head, jnp.float32).reshape(-1, m2)
    conv = jnp.asarray(conv, jnp.float32).reshape(-1, CONV_DIM)
    B = body.shape[0]

    if B < min_pallas_batch:
        return _small_batch_forward(body, head, conv, packed)

    # Batch tile: large tiles amortize the ~0.35us per-grid-step overhead, but
    # keep grid length >= 2 so both v7x TensorCores get work on the "parallel"
    # batch axis.  block_b=1024 stays well inside v5e's 16 MiB scoped VMEM.
    if B > block_b:
        tb = block_b                                   # grid >= 2 automatically
    elif B >= 256:
        tb = _round_up(pl.cdiv(B, 2), 128)             # grid of 2
    else:
        tb = _round_up(B, 8)                           # single step, tiny batch
    b_pad = _round_up(B, tb)
    grid = (b_pad // tb,)

    def pad_rows(x):  # batch-dim padding only; no lane padding in HBM
        return jnp.pad(x, ((0, b_pad - x.shape[0]), (0, 0)))

    head_p, body_p, conv_p = pad_rows(head), pad_rows(body), pad_rows(conv)

    k_pad, h_pad = packed["k_pad"], packed["h_pad"]
    kernel = _make_similarity_kernel(m2, k_pad)

    out_t = pl.pallas_call(
        kernel,
        out_shape=jax.ShapeDtypeStruct((OUT_ROWS, b_pad), jnp.float32),
        grid=grid,
        in_specs=[
            pl.BlockSpec((tb, m2), lambda i: (i, 0)),           # head rows
            pl.BlockSpec((tb, m2), lambda i: (i, 0)),           # body rows
            pl.BlockSpec((tb, CONV_DIM), lambda i: (i, 0)),     # conv rows
            pl.BlockSpec((k_pad, h_pad), lambda i: (0, 0)),     # fused wh (resident)
            pl.BlockSpec((OUT_ROWS, h_pad), lambda i: (0, 0)),  # wp^T (resident)
            pl.BlockSpec((1, h_pad), lambda i: (0, 0)),         # wh bias row
            pl.BlockSpec((OUT_ROWS, 1), lambda i: (0, 0)),      # wp bias column
        ],
        out_specs=pl.BlockSpec((OUT_ROWS, tb), lambda i: (0, i)),
        compiler_params=pltpu.CompilerParams(
            dimension_semantics=("parallel",)),
    )(head_p, body_p, conv_p, packed["w1"], packed["w2t"],
      packed["bh"], packed["bp"])

    return out_t[:2, :B].T                                       # (B, 2)


if __name__ == "__main__":
    mem_dim = 32
    hidden_dim = 32
    feat_dim = 8 * mem_dim + 70

    key = jax.random.PRNGKey(0)
    (k_whw, k_whb, k_wpw, k_wpb, k_body, k_head, k_conv,
     k_bb, k_bh, k_bc, k_b2, k_h2, k_c2) = jax.random.split(key, 13)

    # Deterministic synthetic parameters (shapes from Similarity.__init__).
    params = {
        "wh_w": jax.random.normal(k_whw, (feat_dim, hidden_dim), jnp.float32) * 0.05,
        "wh_b": jax.random.normal(k_whb, (1, hidden_dim), jnp.float32) * 0.05,
        "wp_w": jax.random.normal(k_wpw, (hidden_dim, 2), jnp.float32) * 0.05,
        "wp_b": jax.random.normal(k_wpb, (1, 2), jnp.float32) * 0.05,
    }
    packed = pack_similarity_params(params, mem_dim)

    def reference(body, head, conv):
        """Pure-JAX restatement of the PyTorch forward."""
        conv = conv.reshape(70, 1)
        head = head.reshape(2 * mem_dim, 1)
        body = body.reshape(2 * mem_dim, 1)
        diff = jnp.abs(body - head)
        ang = body * head
        feature_vec = jnp.concatenate((head, body, diff, ang, conv), axis=0)
        out = jax.nn.sigmoid(feature_vec.T @ params["wh_w"] + params["wh_b"])
        return out @ params["wp_w"] + params["wp_b"]

    # ---- single (body, head, conv) pair: module-style call, XLA fast path ----
    body = jax.random.normal(k_body, (2 * mem_dim,), jnp.float32)
    head = jax.random.normal(k_head, (2 * mem_dim,), jnp.float32)
    conv = jax.random.normal(k_conv, (70,), jnp.float32)
    out1 = jax.block_until_ready(similarity_forward(body, head, conv, packed))
    ref1 = reference(body, head, conv)
    assert out1.shape == (1, 2)
    assert jnp.allclose(out1, ref1, atol=1e-4, rtol=1e-4), (out1, ref1)

    # ---- batched pairs: Pallas kernel, grid of 2 "parallel" steps (tb=128) ----
    B = 256
    bodies = jax.random.normal(k_bb, (B, 2 * mem_dim), jnp.float32)
    heads = jax.random.normal(k_bh, (B, 2 * mem_dim), jnp.float32)
    convs = jax.random.normal(k_bc, (B, 70), jnp.float32)
    outB = jax.block_until_ready(similarity_forward(bodies, heads, convs, packed))
    refB = jax.vmap(lambda b, h, c: reference(b, h, c)[0])(bodies, heads, convs)
    assert outB.shape == (B, 2)
    assert jnp.allclose(outB, refB, atol=1e-4, rtol=1e-4), (outB, refB)

    # ---- ragged batch: exercises row padding (B=1000 -> b_pad=1024, tb=512) ----
    B2 = 1000
    bodies2 = jax.random.normal(k_b2, (B2, 2 * mem_dim), jnp.float32)
    heads2 = jax.random.normal(k_h2, (B2, 2 * mem_dim), jnp.float32)
    convs2 = jax.random.normal(k_c2, (B2, 70), jnp.float32)
    out2 = jax.block_until_ready(similarity_forward(bodies2, heads2, convs2, packed))
    ref2 = jax.vmap(lambda b, h, c: reference(b, h, c)[0])(bodies2, heads2, convs2)
    assert out2.shape == (B2, 2)
    assert jnp.allclose(out2, ref2, atol=1e-4, rtol=1e-4), (out2, ref2)

    print("KERNEL_OK")
</pallas_src>

<mosaic_0001>
module attributes {stable_mosaic.version = 11 : i64} {
  func.func @kernel(%arg0: i32, %arg1: memref<128x64xf32, #tpu.memory_space<vmem>>, %arg2: memref<128x64xf32, #tpu.memory_space<vmem>>, %arg3: memref<128x70xf32, #tpu.memory_space<vmem>>, %arg4: memref<384x128xf32, #tpu.memory_space<vmem>>, %arg5: memref<8x128xf32, #tpu.memory_space<vmem>>, %arg6: memref<1x128xf32, #tpu.memory_space<vmem>>, %arg7: memref<8x1xf32, #tpu.memory_space<vmem>>, %arg8: memref<8x128xf32, #tpu.memory_space<vmem>>) attributes {dimension_semantics = [#tpu.dimension_semantics<parallel>], iteration_bounds = array<i64: 2>, scalar_prefetch = 0 : i64, scratch_operands = 0 : i64, tpu.core_type = #tpu.core_type<tc>, window_params = [{transform_indices = @transform_0, window_bounds = array<i64: 128, 64>}, {transform_indices = @transform_1, window_bounds = array<i64: 128, 64>}, {transform_indices = @transform_2, window_bounds = array<i64: 128, 70>}, {pipeline_mode = #tpu.pipeline_mode<synchronous>, transform_indices = @transform_3, window_bounds = array<i64: 384, 128>}, {pipeline_mode = #tpu.pipeline_mode<synchronous>, transform_indices = @transform_4, window_bounds = array<i64: 8, 128>}, {pipeline_mode = #tpu.pipeline_mode<synchronous>, transform_indices = @transform_5, window_bounds = array<i64: 1, 128>}, {pipeline_mode = #tpu.pipeline_mode<synchronous>, transform_indices = @transform_6, window_bounds = array<i64: 8, 1>}, {transform_indices = @transform_7, window_bounds = array<i64: 8, 128>}]} {
    %c0 = arith.constant 0 : index
    %c0_0 = arith.constant 0 : index
    %0 = vector.load %arg1[%c0, %c0_0] : memref<128x64xf32, #tpu.memory_space<vmem>>, vector<128x64xf32>
    %c0_1 = arith.constant 0 : index
    %c0_2 = arith.constant 0 : index
    %1 = vector.load %arg2[%c0_1, %c0_2] : memref<128x64xf32, #tpu.memory_space<vmem>>, vector<128x64xf32>
    %c0_3 = arith.constant 0 : index
    %c0_4 = arith.constant 0 : index
    %2 = vector.load %arg3[%c0_3, %c0_4] : memref<128x70xf32, #tpu.memory_space<vmem>>, vector<128x70xf32>
    %3 = arith.subf %1, %0 : vector<128x64xf32>
    %4 = math.absf %3 : vector<128x64xf32>
    %5 = arith.mulf %1, %0 : vector<128x64xf32>
    %cst = arith.constant 0.000000e+00 : f32
    %6 = vector.broadcast %cst : f32 to vector<128x58xf32>
    %7 = tpu.concatenate %0, %1, %4, %5, %2, %6 in 1 : vector<128x64xf32>, vector<128x64xf32>, vector<128x64xf32>, vector<128x64xf32>, vector<128x70xf32>, vector<128x58xf32> -> vector<128x384xf32>
    %c0_5 = arith.constant 0 : index
    %c0_6 = arith.constant 0 : index
    %8 = vector.load %arg4[%c0_5, %c0_6] : memref<384x128xf32, #tpu.memory_space<vmem>>, vector<384x128xf32>
    %cst_7 = arith.constant dense<0.000000e+00> : vector<128x128xf32>
    %9 = tpu.matmul %7, %8, %cst_7 {dimension_numbers = #tpu.dot_dimension_numbers<[1], [0], [0], [1], [0, 0, 1, 1], [], []>} : vector<128x384xf32>, vector<384x128xf32>, vector<128x128xf32> -> vector<128x128xf32>
    %c0_8 = arith.constant 0 : index
    %c0_9 = arith.constant 0 : index
    %10 = vector.load %arg6[%c0_8, %c0_9] : memref<1x128xf32, #tpu.memory_space<vmem>>, vector<1x128xf32>
    %11 = vector.broadcast %10 : vector<1x128xf32> to vector<128x128xf32>
    %12 = arith.addf %9, %11 : vector<128x128xf32>
    %13 = arith.negf %12 : vector<128x128xf32>
    %14 = math.exp %13 : vector<128x128xf32>
    %cst_10 = arith.constant 1.000000e+00 : f32
    %15 = vector.broadcast %cst_10 : f32 to vector<128x128xf32>
    %16 = arith.addf %15, %14 : vector<128x128xf32>
    %17 = arith.divf %15, %16 : vector<128x128xf32>
    %c0_11 = arith.constant 0 : index
    %c0_12 = arith.constant 0 : index
    %18 = vector.load %arg5[%c0_11, %c0_12] : memref<8x128xf32, #tpu.memory_space<vmem>>, vector<8x128xf32>
    %cst_13 = arith.constant dense<0.000000e+00> : vector<8x128xf32>
    %19 = tpu.matmul %18, %17, %cst_13 {dimension_numbers = #tpu.dot_dimension_numbers<[1], [1], [0], [0], [0, 0, 1, 0], [], []>} : vector<8x128xf32>, vector<128x128xf32>, vector<8x128xf32> -> vector<8x128xf32>
    %c0_14 = arith.constant 0 : index
    %c0_15 = arith.constant 0 : index
    %20 = vector.load %arg7[%c0_14, %c0_15] : memref<8x1xf32, #tpu.memory_space<vmem>>, vector<8x1xf32>
    %21 = vector.broadcast %20 : vector<8x1xf32> to vector<8x128xf32>
    %22 = arith.addf %19, %21 : vector<8x128xf32>
    %c0_16 = arith.constant 0 : index
    %c0_17 = arith.constant 0 : index
    %23 = vector.load %arg8[%c0_16, %c0_17] : memref<8x128xf32, #tpu.memory_space<vmem>>, vector<8x128xf32>
    tpu.vector_store %arg8[%c0_16, %c0_17], %22 {strides = array<i32>} : memref<8x128xf32, #tpu.memory_space<vmem>>, vector<8x128xf32>,
    return
  }
  func.func @transform_0(%arg0: i32) -> (i32, i32) {
    %c0_i32 = arith.constant 0 : i32
    %c0_i32_0 = arith.constant 0 : i32
    return %arg0, %c0_i32 : i32, i32
  }
  func.func @transform_1(%arg0: i32) -> (i32, i32) {
    %c0_i32 = arith.constant 0 : i32
    %c0_i32_0 = arith.constant 0 : i32
    return %arg0, %c0_i32 : i32, i32
  }
  func.func @transform_2(%arg0: i32) -> (i32, i32) {
    %c0_i32 = arith.constant 0 : i32
    %c0_i32_0 = arith.constant 0 : i32
    return %arg0, %c0_i32 : i32, i32
  }
  func.func @transform_3(%arg0: i32) -> (i32, i32) {
    %c0_i32 = arith.constant 0 : i32
    %c0_i32_0 = arith.constant 0 : i32
    %c0_i32_1 = arith.constant 0 : i32
    return %c0_i32, %c0_i32_0 : i32, i32
  }
  func.func @transform_4(%arg0: i32) -> (i32, i32) {
    %c0_i32 = arith.constant 0 : i32
    %c0_i32_0 = arith.constant 0 : i32
    %c0_i32_1 = arith.constant 0 : i32
    return %c0_i32, %c0_i32_0 : i32, i32
  }
  func.func @transform_5(%arg0: i32) -> (i32, i32) {
    %c0_i32 = arith.constant 0 : i32
    %c0_i32_0 = arith.constant 0 : i32
    %c0_i32_1 = arith.constant 0 : i32
    return %c0_i32, %c0_i32_0 : i32, i32
  }
  func.func @transform_6(%arg0: i32) -> (i32, i32) {
    %c0_i32 = arith.constant 0 : i32
    %c0_i32_0 = arith.constant 0 : i32
    %c0_i32_1 = arith.constant 0 : i32
    return %c0_i32, %c0_i32_0 : i32, i32
  }
  func.func @transform_7(%arg0: i32) -> (i32, i32) {
    %c0_i32 = arith.constant 0 : i32
    %c0_i32_0 = arith.constant 0 : i32
    return %c0_i32, %arg0 : i32, i32
  }
}

</mosaic_0001>

<bundles_post_ra>
// kernel: tpu_custom_call.1
= control target key start
LH: loop header
LB: loop body
LE: loop exit
PB: predicated region body
PF: predicated region fallthrough
CT: control target
= control target key end

     0   :  { %12 = vsyncpa [#allocation3], 0  ;;  %s2468_s0 = inlined_call_operand.vmem [shape: f32[256,64], index: 0, kind: input, shape index: {}]   ;;  %s2469_s1 = inlined_call_operand.vmem [shape: f32[256,64], index: 1, kind: input, shape index: {}]   ;;  %s2470_s2 = inlined_call_operand.vmem [shape: f32[256,70], index: 2, kind: input, shape index: {}]   ;;  %s2471_s3 = inlined_call_operand.vmem [shape: f32[384,128], index: 3, kind: input, shape index: {}]   ;;  %s2472_s4 = inlined_call_operand.vmem [shape: f32[8,128], index: 4, kind: input, shape index: {}]   ;;  %s2473_s5 = inlined_call_operand.vmem [shape: f32[1,128], index: 5, kind: input, shape index: {}]   ;;  %s2474_s6 = inlined_call_operand.vmem [shape: f32[8,1], index: 6, kind: input, shape index: {}]   ;;  %s2475_s7 = inlined_call_operand.hbm [shape: f32[8,256], index: 7, kind: output, shape index: {}]  }
   0x1   :  { %14 = vsyncpa [#allocation3 + $0x1], 0  ;;  %s1868_s24 = smov 0   ;;  %s1870_s25 = smov 0  }
   0x2   :  { %s1872_s26 = smov 0   ;;  %s1874_s27 = smov 0  }
   0x3 LB: > { %s1889_s28 = sadd.s32 4294967295, %s1820_s27   ;;  %s1213_s29 = sadd.s32 4294967294, %s1820_s27   ;;  %s1820_s27 = sphi %s1874_s27, %s2484_s27   ;;  %s1816_s26 = sphi %s1872_s26, %s2483_s26   ;;  %s1812_s25 = sphi %s1870_s25, %s2482_s25   ;;  %s1808_s24 = sphi %s1868_s24, %s2481_s24  }
   0x4   : > { %s1893_s30 = sadd.s32 1, %s1820_s27   ;;  %s189_s8 = sadd.s32 1, %s1816_s26 }
   0x5   : > { %s186_s9 = ssub.s32 %s1820_s27, %s1893_s30  ;;  %p199_p0 = scmp.ne.s32.totalorder %s1816_s26, %s1812_s25 }
   0x6   : > { %p187_p1 = scmp.eq.s32.totalorder %s186_s9, 0  ;;  %p200_p2 = scmp.eq.s32.totalorder %s1889_s28, 1 }
   0x7   : > { %p205_p3 = scmp.ne.s32.totalorder %s1812_s25, %s1808_s24  ;;  %p206_p4 = scmp.eq.s32.totalorder %s1213_s29, 1 }
   0x8   : > { %s1904_s10 = scalar_select %p187_p1, %s1816_s26, %s189_s8  }
   0x9   : > { %p1906_p5 = por %p200_p2, %p199_p0  ;;  %p1910_p6 = por %p206_p4, %p205_p3 }
   0xa   : > { %p1216_p7 = scmp.ge.s32.totalorder %s1820_s27, 1  ;;  %p263_p8 = scmp.lt.s32.totalorder %s1820_s27, 3 }
   0xc   : > { %p264_p9 = pnand %p1216_p7, %p263_p8 }
   0xd   : > { %s1218_s13 = sshll.u32 (!%p264_p9), %s1889_s28, 4  ;;  %v613_v0 = vld [vmem:[%s2471_s3 + $0x80] sm:$0xff] (!%p264_p9)  ;;  %v614_v1 = vld [vmem:[%s2471_s3 + $0x88] sm:$0xff] (!%p264_p9)  ;;  %v615_v5 = vld [vmem:[%s2471_s3 + $0x90] sm:$0xff] (!%p264_p9)  ;;  %s2476_s22 = smov (!%p264_p9), 64   ;;  %vm580_vm0 = vcmask (!%p264_p9), 572416  }
   0xe   : > { %267 = sbr.rel (%p264_p9) target bundleno = 691 (0x2b3), region = 48  ;;  %v597_v2 = vld [vmem:[%s2471_s3] sm:$0xff] (!%p264_p9)  ;;  %p306_p10 = scmp.lt.s32.totalorder (!%p264_p9), %s1218_s13, 31  ;;  %v1481_v3 = vpack.c.bf16 (!%p264_p9), %v614_v1, %v613_v0  ;;  %v598_v4 = vld [vmem:[%s2471_s3 + $0x8] sm:$0xff] (!%p264_p9)  ;;  %v616_v6 = vld [vmem:[%s2471_s3 + $0x98] sm:$0xff] (!%p264_p9)  ;;  %vm547_vm1 = vcmask (!%p264_p9), 523264  }
   0xf   : > { %v1483_v7 = vpack.c.bf16 (!%p264_p9), %v598_v4, %v597_v2  ;;  %v1485_v8 = vpack.c.bf16 (!%p264_p9), %v616_v6, %v615_v5  ;;  %v629_v9 = vld [vmem:[%s2471_s3 + $0x100] sm:$0xff] (!%p264_p9)  ;;  %v630_v10 = vld [vmem:[%s2471_s3 + $0x108] sm:$0xff] (!%p264_p9)  ;;  %v599_v11 = vld [vmem:[%s2471_s3 + $0x10] sm:$0xff] (!%p264_p9)  ;;  %s2480_s20 = smov (!%p264_p9), 64   ;;  %vm1824_vm2 = vmmov (!%p264_p9), 0   ;;  %s1258_s8 = sshll.u32 (!%p264_p9), %s1889_s28, 7 }
  0x10   : > { %1482 = vmatprep.subr.bf16.mxu0 (!%p264_p9), %v1481_v3  ;;  %v1513_v12 = vpack.c.bf16 (!%p264_p9), %v630_v10, %v629_v9  ;;  %v600_v13 = vld [vmem:[%s2471_s3 + $0x18] sm:$0xff] (!%p264_p9)  ;;  %v617_v14 = vld [vmem:[%s2471_s3 + $0xa0] sm:$0xff] (!%p264_p9)  ;;  %v618_v15 = vld [vmem:[%s2471_s3 + $0xa8] sm:$0xff] (!%p264_p9)  ;;  %s2426_s18 = scalar_lea.hbm (!%p264_p9), %s2475_s7, %s1258_s8  ;;  %s1827_s28 = smov (!%p264_p9), [#allocation2]  }
  0x11   : > { %1484 = vmatpush3.bf16.msra.mxu0 (!%p264_p9), %v1483_v7  ;;  %v1487_v16 = vpack.c.bf16 (!%p264_p9), %v600_v13, %v599_v11  ;;  %v631_v17 = vld [vmem:[%s2471_s3 + $0x110] sm:$0xff] (!%p264_p9)  ;;  %v632_v18 = vld [vmem:[%s2471_s3 + $0x118] sm:$0xff] (!%p264_p9)  ;;  %v1489_v19 = vpack.c.bf16 (!%p264_p9), %v618_v15, %v617_v14  ;;  %v601_v21 = vld [vmem:[%s2471_s3 + $0x20] sm:$0xff] (!%p264_p9) }
  0x12   : > { %1486 = vmatprep.subr.bf16.mxu0 (!%p264_p9), %v1485_v8  ;;  %1514 = vmatprep.subr.bf16.mxu1 (!%p264_p9), %v1513_v12  ;;  %v1517_v20 = vpack.c.bf16 (!%p264_p9), %v632_v18, %v631_v17  ;;  %v602_v22 = vld [vmem:[%s2471_s3 + $0x28] sm:$0xff] (!%p264_p9)  ;;  %v619_v23 = vld [vmem:[%s2471_s3 + $0xb0] sm:$0xff] (!%p264_p9)  ;;  %v620_v24 = vld [vmem:[%s2471_s3 + $0xb8] sm:$0xff] (!%p264_p9) }
  0x13   : > { %1516 = vmatpush3.bf16.msra.mxu1 (!%p264_p9), %v1513_v12  ;;  %v633_v25 = vld [vmem:[%s2471_s3 + $0x120] sm:$0xff] (!%p264_p9)  ;;  %v634_v26 = vld [vmem:[%s2471_s3 + $0x128] sm:$0xff] (!%p264_p9)  ;;  %v1491_v35 = vpack.c.bf16 (!%p264_p9), %v602_v22, %v601_v21  ;;  %v1493_v46 = vpack.c.bf16 (!%p264_p9), %v620_v24, %v619_v23  ;;  %v603_v56 = vld [vmem:[%s2471_s3 + $0x30] sm:$0xff] (!%p264_p9) }
  0x14   : > { %1518 = vmatprep.subr.bf16.mxu1 (!%p264_p9), %v1517_v20  ;;  %v1521_v30 = vpack.c.bf16 (!%p264_p9), %v634_v26, %v633_v25  ;;  %v604_v1 = vld [vmem:[%s2471_s3 + $0x38] sm:$0xff] (!%p264_p9)  ;;  %v621_v3 = vld [vmem:[%s2471_s3 + $0xc0] sm:$0xff] (!%p264_p9)  ;;  %v622_v4 = vld [vmem:[%s2471_s3 + $0xc8] sm:$0xff] (!%p264_p9) }
  0x15   : > { %s2486_s13 = smov (!%p306_p10, %s1218_s13), 31  ;;  %1488 = vmatpush3.bf16.msra.mxu0 %v1487_v16  ;;  %v1495_v2 = vpack.c.bf16 %v604_v1, %v603_v56  ;;  %v635_v5 = vld [vmem:[%s2471_s3 + $0x130] sm:$0xff]  ;;  %v1497_v9 = vpack.c.bf16 %v622_v4, %v621_v3  ;;  %v636_v10 = vld [vmem:[%s2471_s3 + $0x138] sm:$0xff]  ;;  %v605_v11 = vld [vmem:[%s2471_s3 + $0x40] sm:$0xff] }
  0x16   : > { %s1959_s16 = sshll.u32 %s2486_s13, 3  ;;  %1490 = vmatprep.subr.bf16.mxu0 %v1489_v19  ;;  %v606_v12 = vld [vmem:[%s2471_s3 + $0x48] sm:$0xff]  ;;  %v1525_v15 = vpack.c.bf16 %v636_v10, %v635_v5  ;;  %v623_v17 = vld [vmem:[%s2471_s3 + $0xd0] sm:$0xff]  ;;  %v624_v18 = vld [vmem:[%s2471_s3 + $0xd8] sm:$0xff]  ;;  %s302_s13 = sand.u32 1, %s1812_s25  }
  0x17   : > { %s1974_s29 = scalar_lea.vmem %s2468_s0, %s1959_s16  ;;  %s1980_s14 = scalar_lea.vmem %s2469_s1, %s1959_s16  ;;  %1520 = vmatpush3.bf16.msra.mxu1 %v1517_v20  ;;  %v1499_v16 = vpack.c.bf16 %v606_v12, %v605_v11  ;;  %v637_v19 = vld [vmem:[%s2471_s3 + $0x140] sm:$0xff]  ;;  %v1501_v22 = vpack.c.bf16 %v624_v18, %v623_v17  ;;  %v638_v23 = vld [vmem:[%s2471_s3 + $0x148] sm:$0xff]  ;;  %v607_v24 = vld [vmem:[%s2471_s3 + $0x50] sm:$0xff] }
  0x18   : > { %v1992_v27 = vld [vmem:[%s1974_s29] sm:$0xff]  ;;  %v1998_v29 = vld [vmem:[%s1974_s29 + $0x8] sm:$0xff]  ;;  %v2006_v33 = vld [vmem:[%s1974_s29 + $0x10] sm:$0xff]  ;;  %1522 = vmatprep.subr.bf16.mxu1 %v1521_v30  ;;  %s1217_s23 = sshll.u32 %s302_s13, 3 }
  0x19   : > { %v1995_v28 = vld [vmem:[%s1980_s14] sm:$0xff]  ;;  %v2003_v32 = vld [vmem:[%s1980_s14 + $0x8] sm:$0xff]  ;;  %v2009_v34 = vld [vmem:[%s1980_s14 + $0x10] sm:$0xff]  ;;  %1492 = vmatpush3.bf16.msra.mxu0 %v1491_v35  ;;  %s304_s9 = scalar_lea.vmem [#allocation2], %s1217_s23 }
  0x1a   : > { %v403_v31 = vmul.f32 %v1995_v28, %v1992_v27  ;;  %v404_v36 = vmul.f32 %v2003_v32, %v1998_v29  ;;  %v405_v37 = vmul.f32 %v2009_v34, %v2006_v33  ;;  %v2016_v38 = vld [vmem:[%s1974_s29 + $0x18] sm:$0xff]  ;;  %v2022_v40 = vld [vmem:[%s1974_s29 + $0x20] sm:$0xff]  ;;  %v2031_v44 = vld [vmem:[%s1974_s29 + $0x28] sm:$0xff]  ;;  %1494 = vmatprep.subr.bf16.mxu0 %v1493_v46  ;;  %s1130_s15 = sshll.u32 %s304_s9, 4  ;;  %s2428_s15 = int_to_ptr.vmem [resolvable:$true] %s1130_s15 }
  0x1b   : > { %v2019_v39 = vld [vmem:[%s1980_s14 + $0x18] sm:$0xff]  ;;  %v2028_v43 = vld [vmem:[%s1980_s14 + $0x20] sm:$0xff]  ;;  %v2034_v45 = vld [vmem:[%s1980_s14 + $0x28] sm:$0xff]  ;;  %1524 = vmatpush3.bf16.msra.mxu1 %v1521_v30  ;;  %v1529_v30 = vpack.c.bf16 %v638_v23, %v637_v19 }
  0x1c   : > { %v1613_v41 = vpack.i.bf16 %v1995_v28, %v403_v31  ;;  %v406_v42 = vmul.f32 %v2019_v39, %v2016_v38  ;;  %v1623_v47 = vpack.i.bf16 %v2009_v34, %v405_v37  ;;  %v1618_v48 = vpack.i.bf16 %v2003_v32, %v404_v36  ;;  %v2046_v52 = vld [vmem:[%s1974_s29 + $0x30] sm:$0xff]  ;;  %v2052_v54 = vld [vmem:[%s1974_s29 + $0x38] sm:$0xff]  ;;  %v2065_v59 = vld [vmem:[%s1974_s29 + $0x40] sm:$0xff]  ;;  %1526 = vmatprep.subr.bf16.mxu1 %v1525_v15 }
  0x1d   : > { %v407_v49 = vmul.f32 %v2028_v43, %v2022_v40  ;;  %v408_v51 = vmul.f32 %v2034_v45, %v2031_v44  ;;  %v2049_v53 = vld [vmem:[%s1980_s14 + $0x30] sm:$0xff]  ;;  %v2055_v55 = vld [vmem:[%s1980_s14 + $0x38] sm:$0xff]  ;;  %v2068_v60 = vld [vmem:[%s1980_s14 + $0x40] sm:$0xff]  ;;  %1496 = vmatpush3.bf16.msra.mxu0 %v1495_v2 }
  0x1e   : > { %1614 = vrot.lane.b32.xlu0 %v1613_v41, %s2476_s22  ;;  %1624 = vrot.lane.b32.xlu1 %v1623_v47, %s2476_s22  ;;  %v1628_v50 = vpack.i.bf16 %v2019_v39, %v406_v42  ;;  %v409_v58 = vmul.f32 %v2049_v53, %v2046_v52  ;;  %v410_v62 = vmul.f32 %v2055_v55, %v2052_v54  ;;  %v2075_v63 = vld [vmem:[%s1974_s29 + $0x48] sm:$0xff]  ;;  %v2095_v7 = vld [vmem:[%s1974_s29 + $0x50] sm:$0xff] }
  0x1f   : > { %v1633_v57 = vpack.i.bf16 %v2028_v43, %v407_v49  ;;  %v1638_v61 = vpack.i.bf16 %v2034_v45, %v408_v51  ;;  %v2078_v0 = vld [vmem:[%s1980_s14 + $0x48] sm:$0xff]  ;;  %v411_v6 = vmul.f32 %v2068_v60, %v2065_v59  ;;  %v2098_v8 = vld [vmem:[%s1980_s14 + $0x50] sm:$0xff]  ;;  %v2112_v14 = vld [vmem:[%s1974_s29 + $0x58] sm:$0xff]  ;;  %1498 = vmatprep.subr.bf16.mxu0 %v1497_v9  ;;  %1528 = vmatpush3.bf16.msra.mxu1 %v1525_v15 }
  0x20   : > { %v1643_v13 = vpack.i.bf16 %v2049_v53, %v409_v58  ;;  %v1648_v20 = vpack.i.bf16 %v2055_v55, %v410_v62  ;;  %v412_v21 = vmul.f32 %v2078_v0, %v2075_v63  ;;  %v608_v25 = vld [vmem:[%s2471_s3 + $0x58] sm:$0xff]  ;;  %v625_v31 = vld [vmem:[%s2471_s3 + $0xe0] sm:$0xff]  ;;  %v626_v35 = vld [vmem:[%s2471_s3 + $0xe8] sm:$0xff]  ;;  %v413_v42 = vmul.f32 %v2098_v8, %v2095_v7  ;;  %1530 = vmatprep.subr.bf16.mxu1 %v1529_v30 }
  0x21   : > { %v2137_v26 = vld [vmem:[%s1980_s14 + $0x58] sm:$0xff]  ;;  %v639_v36 = vld [vmem:[%s2471_s3 + $0x150] sm:$0xff]  ;;  %v1653_v41 = vpack.i.bf16 %v2068_v60, %v411_v6  ;;  %v2162_v46 = vld [vmem:[%s1974_s29 + $0x60] sm:$0xff]  ;;  %1500 = vmatpush3.bf16.msra.mxu0 %v1499_v16  ;;  %v1503_v49 = vpack.c.bf16 %v608_v25, %v607_v24 }
  0x22   : > { %1619 = vrot.lane.b32.xlu0 %v1618_v48, %s2476_s22  ;;  %1629 = vrot.lane.b32.xlu1 %v1628_v50, %s2476_s22  ;;  %v640_v37 = vld [vmem:[%s2471_s3 + $0x158] sm:$0xff]  ;;  %v2165_v47 = vld [vmem:[%s1980_s14 + $0x60] sm:$0xff]  ;;  %v1658_v50 = vpack.i.bf16 %v2078_v0, %v412_v21  ;;  %v414_v51 = vmul.f32 %v2137_v26, %v2112_v14  ;;  %v1663_v6 = vpack.i.bf16 %v2098_v8, %v413_v42 }
  0x23   : > { %v2168_v48 = vld [vmem:[%s1974_s29 + $0x68] sm:$0xff]  ;;  %1502 = vmatprep.subr.bf16.mxu0 %v1501_v22  ;;  %v609_v58 = vld [vmem:[%s2471_s3 + $0x60] sm:$0xff]  ;;  %v1533_v62 = vpack.c.bf16 %v640_v37, %v639_v36  ;;  %v627_v1 = vld [vmem:[%s2471_s3 + $0xf0] sm:$0xff]  ;;  %1532 = vmatpush3.bf16.msra.mxu1 %v1529_v30  ;;  %v415_v9 = vmul.f32 %v2165_v47, %v2162_v46 }
  0x24   : > { %v2175_v56 = vld [vmem:[%s1980_s14 + $0x68] sm:$0xff]  ;;  %v628_v2 = vld [vmem:[%s2471_s3 + $0xf8] sm:$0xff]  ;;  %v641_v4 = vld [vmem:[%s2471_s3 + $0x160] sm:$0xff] }
  0x25   : > { %v642_v5 = vld [vmem:[%s2471_s3 + $0x168] sm:$0xff]  ;;  %v2202_v10 = vld [vmem:[%s1974_s29 + $0x70] sm:$0xff]  ;;  %1504 = vmatpush3.bf16.msra.mxu0 %v1503_v49  ;;  %v416_v15 = vmul.f32 %v2175_v56, %v2168_v48  ;;  %v2212_v16 = vld [vmem:[%s1974_s29 + $0x78] sm:$0xff]  ;;  %v1509_v17 = vpack.c.bf16 %v628_v2, %v627_v1  ;;  %1534 = vmatprep.subr.bf16.mxu1 %v1533_v62  ;;  %v1673_v24 = vpack.i.bf16 %v2165_v47, %v415_v9 }
  0x26   : > { %1634 = vrot.lane.b32.xlu0 %v1633_v57, %s2476_s22  ;;  %1639 = vrot.lane.b32.xlu1 %v1638_v61, %s2476_s22  ;;  %s2155_s22 = scalar_lea.vmem %s2470_s2, %s1959_s16  ;;  %v1505_v57 = vpack.c.bf16 %v626_v35, %v625_v31  ;;  %v610_v61 = vld [vmem:[%s2471_s3 + $0x68] sm:$0xff]  ;;  %v2205_v11 = vld [vmem:[%s1980_s14 + $0x70] sm:$0xff]  ;;  %v1537_v21 = vpack.c.bf16 %v642_v5, %v641_v4 }
  0x27   : > { %v355_v3 = vld [vmem:[%s2155_s22] sm:$0xff]  ;;  %v1507_v12 = vpack.c.bf16 %v610_v61, %v609_v58  ;;  %v611_v18 = vld [vmem:[%s2471_s3 + $0x70] sm:$0xff]  ;;  %v612_v19 = vld [vmem:[%s2471_s3 + $0x78] sm:$0xff]  ;;  %1536 = vmatpush3.bf16.msra.mxu1 %v1533_v62  ;;  %v417_v25 = vmul.f32 %v2205_v11, %v2202_v10  ;;  %v1678_v31 = vpack.i.bf16 %v2175_v56, %v416_v15  ;;  %v373_v15 = vsub.f32 %v2009_v34, %v2006_v33 }
  0x28   : > { %1422 = vmatprep.mubr.msk.f32.mxu1 %vm580_vm0, %v355_v3  ;;  %1506 = vmatprep.subr.bf16.mxu0 %v1505_v57  ;;  %v643_v22 = vld [vmem:[%s2471_s3 + $0x170] sm:$0xff]  ;;  %v644_v23 = vld [vmem:[%s2471_s3 + $0x178] sm:$0xff]  ;;  %v1511_v30 = vpack.c.bf16 %v612_v19, %v611_v18  ;;  %v356_v42 = vld [vmem:[%s2155_s22 + $0x8] sm:$0xff] }
  0x29   : > { %1508 = vmatpush3.bf16.msra.mxu0 %v1507_v12  ;;  %v1541_v36 = vpack.c.bf16 %v644_v23, %v643_v22  ;;  %1538 = vmatprep.subr.bf16.mxu1 %v1537_v21  ;;  %v1683_v37 = vpack.i.bf16 %v2205_v11, %v417_v25  ;;  %v357_v49 = vld [vmem:[%s2155_s22 + $0x10] sm:$0xff]  ;;  %v360_v57 = vld [vmem:[%s2155_s22 + $0x28] sm:$0xff]  ;;  %v362_v61 = vld [vmem:[%s2155_s22 + $0x38] sm:$0xff]  ;;  %v371_v12 = vsub.f32 %v1995_v28, %v1992_v27 }
  0x2a   : > { %1644 = vrot.lane.b32.xlu0 %v1643_v13, %s2480_s20  ;;  %1649 = vrot.lane.b32.xlu1 %v1648_v20, %s2480_s20  ;;  %v1668_v13 = vpack.i.bf16 %v2137_v26, %v414_v51  ;;  %v2221_v20 = vld [vmem:[%s1980_s14 + $0x78] sm:$0xff]  ;;  %v359_v51 = vld [vmem:[%s2155_s22 + $0x20] sm:$0xff]  ;;  %s1117_s14 = scalar_lea.sflag [#allocation3], %s302_s13 }
  0x2b   : > { %v418_v35 = vmul.f32 %v2221_v20, %v2212_v16  ;;  %1510 = vmatprep.subr.bf16.mxu0 %v1509_v17  ;;  %1540 = vmatpush3.bf16.msra.mxu1 %v1537_v21  ;;  %v361_v58 = vld [vmem:[%s2155_s22 + $0x30] sm:$0xff]  ;;  %v363_v62 = vld [vmem:[%s2155_s22 + $0x40] sm:$0xff]  ;;  %v364_v1 = vld [vmem:[%s2155_s22 + $0x48] sm:$0xff]  ;;  %v387_v17 = vand.u32 2147483647, %v371_v12 }
  0x2c   : > { %1542 = vmatprep.subr.bf16.mxu1 %v1541_v36  ;;  %v365_v2 = vld [vmem:[%s2155_s22 + $0x50] sm:$0xff]  ;;  %v366_v3 = vld [vmem:[%s2155_s22 + $0x58] sm:$0xff]  ;;  %v367_v4 = vld [vmem:[%s2155_s22 + $0x60] sm:$0xff] }
  0x2d   : > { %1512 = vmatpush3.bf16.msra.mxu0 %v1511_v30  ;;  %v368_v5 = vld [vmem:[%s2155_s22 + $0x68] sm:$0xff]  ;;  %v370_v9 = vld [vmem:[%s2155_s22 + $0x78] sm:$0xff] }
  0x2e   : > { %1654 = vrot.lane.b32.xlu0 %v1653_v41, %s2480_s20  ;;  %1659 = vrot.lane.b32.xlu1 %v1658_v50, %s2480_s20  ;;  %v1688_v41 = vpack.i.bf16 %v2221_v20, %v418_v35  ;;  %v358_v50 = vld [vmem:[%s2155_s22 + $0x18] sm:$0xff] }
  0x2f   : > { %1544 = vmatpush3.bf16.msra.mxu1 %v1541_v36 }
  0x32   : > { %1664 = vrot.lane.b32.xlu0 %v1663_v6, %s2480_s20  ;;  %1669 = vrot.lane.b32.xlu1 %v1668_v13, %s2480_s20  ;;  %v369_v6 = vld [vmem:[%s2155_s22 + $0x70] sm:$0xff]  ;;  %v372_v13 = vsub.f32 %v2003_v32, %v1998_v29  ;;  %v389_v32 = vand.u32 2147483647, %v373_v15  ;;  %s1758_s22 = scalar_lea.vmem %s2428_s15, 128 }
  0x33   : > { %1423 = vmatmul.mubr.msk.f32.vlgmr.msra.gmra.mrb[0].mxu1 %vm580_vm0, %v356_v42  ;;  %v375_v42 = vsub.f32 %v2028_v43, %v2022_v40  ;;  %p1759_p11 = scmp.ne.s32.totalorder %s2428_s15, %s1758_s22 }
  0x34   : > { %1425 = vmatprep.mubr.msk.f32.mxu1 %vm580_vm0, %v357_v49  ;;  %v388_v23 = vand.u32 2147483647, %v372_v13 }
  0x35   : > { %v391_v43 = vand.u32 2147483647, %v375_v42  ;;  %p1760_p12 = pnand %p1759_p11, %p1906_p5 }
  0x36   : > { %1674 = vrot.lane.b32.xlu0 %v1673_v24, %s2480_s20  ;;  %1679 = vrot.lane.b32.xlu1 %v1678_v31, %s2480_s20  ;;  %v374_v24 = vsub.f32 %v2019_v39, %v2016_v38 }
  0x37   : > { %1426 = vmatmul.mubr.msk.f32.gmra.mrb[2].mxu1 %vm580_vm0, %v358_v50  ;;  %p1761_p13 = pneg %p1760_p12 }
  0x38   : > { %1428 = vmatprep.mubr.msk.f32.mxu1 %vm580_vm0, %v359_v51 }
  0x3a   : > { %1684 = vrot.lane.b32.xlu0 %v1683_v37, %s2480_s20  ;;  %1689 = vrot.lane.b32.xlu1 %v1688_v41, %s2480_s20  ;;  %v390_v41 = vand.u32 2147483647, %v374_v24  ;;  %s1762_s20 = sshll.u32 %s1827_s28, 4  ;;  %s1763_s20 = int_to_ptr.vmem [resolvable:$false] %s1762_s20 }
  0x3b   : > { %1429 = vmatmul.mubr.msk.f32.gmra.mrb[4].mxu1 %vm580_vm0, %v360_v57  ;;  %s1764_s19 = scalar_lea.vmem %s1763_s20, 256  ;;  %p1765_p0 = scmp.lt.s32.totalorder %s2428_s15, %s1763_s20 }
  0x3c   : > { %1431 = vmatprep.mubr.msk.f32.mxu1 %vm580_vm0, %v361_v58  ;;  %p1766_p1 = scmp.lt.s32.totalorder %s1764_s19, %s1758_s22 }
  0x3e   : > { %p1767_p2 = por %p1766_p1, %p1765_p0 }
  0x3f   : > { %1432 = vmatmul.mubr.msk.f32.gmra.mrb[6].mxu1 %vm580_vm0, %v362_v61 }
  0x40   : > { %1434 = vmatprep.mubr.msk.f32.mxu1 %vm580_vm0, %v363_v62  ;;  %p1768_p3 = pnand %p1767_p2, %p1761_p13 }
  0x43   : > { %1435 = vmatmul.mubr.msk.f32.gmra.mrb[8].mxu1 %vm580_vm0, %v364_v1  ;;  %v376_v1 = vsub.f32 %v2034_v45, %v2031_v44 }
  0x44   : > { %1437 = vmatprep.mubr.msk.f32.mxu1 %vm580_vm0, %v365_v2 }
  0x47   : > { %1438 = vmatmul.mubr.msk.f32.gmra.mrb[10].mxu1 %vm580_vm0, %v366_v3 }
  0x48   : > { %1440 = vmatprep.mubr.msk.f32.mxu1 %vm580_vm0, %v367_v4 }
  0x4b   : > { %1441 = vmatmul.mubr.msk.f32.gmra.mrb[12].mxu1 %vm580_vm0, %v368_v5 }
  0x4c   : > { %1443 = vmatprep.mubr.msk.f32.mxu1 %vm580_vm0, %v369_v6  ;;  %v392_v6 = vand.u32 2147483647, %v376_v1 }
  0x4f   : > { %1444 = vmatmul.mubr.msk.f32.gmra.mrb[14].mxu1 %vm580_vm0, %v370_v9 }
  0x90   : > { %v1615_v18 = vpop.permute.xlu0 %1614  ;;  %v1625_v22 = vpop.permute.xlu1 %1624 }
  0x91   : > { %v1617_v19 = vunpack.i.h.bf16 %v1615_v18  ;;  %v1616_v21 = vunpack.i.l.bf16 %v1615_v18  ;;  %v1626_v30 = vunpack.i.l.bf16 %v1625_v22  ;;  %v1627_v37 = vunpack.i.h.bf16 %v1625_v22 }
  0x93   : > { %v564_v25 = vsel %vm547_vm1, %v387_v17, %v1616_v21  ;;  %v548_v28 = vsel %vm547_vm1, %v1992_v27, %v1617_v19  ;;  %v566_v27 = vsel %vm547_vm1, %v389_v32, %v1626_v30  ;;  %v550_v58 = vsel %vm547_vm1, %v2006_v33, %v1627_v37 }
  0x94   : > { %v1620_v31 = vpop.permute.xlu0 %1619  ;;  %716 = vmatprep.mubr.f32.mxu0 %v564_v25  ;;  %v1630_v36 = vpop.permute.xlu1 %1629  ;;  %v377_v33 = vsub.f32 %v2049_v53, %v2046_v52 }
  0x95   : > { %v1622_v34 = vunpack.i.h.bf16 %v1620_v31  ;;  %v1621_v35 = vunpack.i.l.bf16 %v1620_v31  ;;  %717 = vmatmul.mubr.f32.vlgmr.msra.gmra.mrb[0].mxu0 %v548_v28  ;;  %v1631_v50 = vunpack.i.l.bf16 %v1630_v36  ;;  %v1632_v57 = vunpack.i.h.bf16 %v1630_v36 }
  0x96   : > { %v393_v17 = vand.u32 2147483647, %v377_v33 }
  0x97   : > { %v565_v39 = vsel %vm547_vm1, %v388_v23, %v1621_v35  ;;  %v549_v49 = vsel %vm547_vm1, %v1998_v29, %v1622_v34  ;;  %v567_v62 = vsel %vm547_vm1, %v390_v41, %v1631_v50  ;;  %v551_v3 = vsel %vm547_vm1, %v2016_v38, %v1632_v57 }
  0x98   : > { %721 = vmatprep.mubr.f32.mxu0 %v565_v39  ;;  %v1635_v51 = vpop.permute.xlu0 %1634  ;;  %v1640_v2 = vpop.permute.xlu1 %1639  ;;  %v378_v38 = vsub.f32 %v2055_v55, %v2052_v54 }
  0x99   : > { %722 = vmatmul.mubr.f32.gmra.mrb[2].mxu0 %v549_v49  ;;  %v1636_v61 = vunpack.i.l.bf16 %v1635_v51  ;;  %v1637_v29 = vunpack.i.h.bf16 %v1635_v51  ;;  %v1641_v4 = vunpack.i.l.bf16 %v1640_v2  ;;  %v1642_v12 = vunpack.i.h.bf16 %v1640_v2 }
  0x9a   : > { %726 = vmatprep.mubr.f32.mxu0 %v566_v27  ;;  %v394_v23 = vand.u32 2147483647, %v378_v38 }
  0x9b   : > { %v568_v5 = vsel %vm547_vm1, %v391_v43, %v1636_v61  ;;  %v552_v45 = vsel %vm547_vm1, %v2022_v40, %v1637_v29  ;;  %v569_v15 = vsel %vm547_vm1, %v392_v6, %v1641_v4  ;;  %v553_v53 = vsel %vm547_vm1, %v2031_v44, %v1642_v12 }
  0x9c   : > { %v1645_v9 = vpop.permute.xlu0 %1644  ;;  %v1650_v18 = vpop.permute.xlu1 %1649  ;;  %v379_v40 = vsub.f32 %v2068_v60, %v2065_v59  ;;  %v380_v44 = vsub.f32 %v2078_v0, %v2075_v63 }
  0x9d   : > { %727 = vmatmul.mubr.f32.gmra.mrb[4].mxu0 %v550_v58  ;;  %v1646_v13 = vunpack.i.l.bf16 %v1645_v9  ;;  %v1647_v19 = vunpack.i.h.bf16 %v1645_v9  ;;  %v1651_v21 = vunpack.i.l.bf16 %v1650_v18  ;;  %v1652_v25 = vunpack.i.h.bf16 %v1650_v18 }
  0x9e   : > { %731 = vmatprep.mubr.f32.mxu0 %v567_v62  ;;  %v395_v32 = vand.u32 2147483647, %v379_v40  ;;  %v396_v37 = vand.u32 2147483647, %v380_v44 }
  0x9f   : > { %v570_v22 = vsel %vm547_vm1, %v393_v17, %v1646_v13  ;;  %v554_v55 = vsel %vm547_vm1, %v2046_v52, %v1647_v19  ;;  %v571_v30 = vsel %vm547_vm1, %v394_v23, %v1651_v21  ;;  %v555_v60 = vsel %vm547_vm1, %v2052_v54, %v1652_v25 }
  0xa0   : > { %v1655_v24 = vpop.permute.xlu0 %1654  ;;  %v1660_v31 = vpop.permute.xlu1 %1659  ;;  %v381_v52 = vsub.f32 %v2098_v8, %v2095_v7  ;;  %v382_v54 = vsub.f32 %v2137_v26, %v2112_v14 }
  0xa1   : > { %732 = vmatmul.mubr.f32.gmra.mrb[6].mxu0 %v551_v3  ;;  %v1656_v28 = vunpack.i.l.bf16 %v1655_v24  ;;  %v1657_v34 = vunpack.i.h.bf16 %v1655_v24  ;;  %v1661_v35 = vunpack.i.l.bf16 %v1660_v31  ;;  %v1662_v42 = vunpack.i.h.bf16 %v1660_v31 }
  0xa2   : > { %736 = vmatprep.mubr.f32.mxu0 %v568_v5  ;;  %v397_v50 = vand.u32 2147483647, %v381_v52  ;;  %v398_v61 = vand.u32 2147483647, %v382_v54  ;;  %v1039_v52 = vld [vmem:[%s2474_s6] sm:$0xff] }
  0xa3   : > { %v572_v36 = vsel %vm547_vm1, %v395_v32, %v1656_v28  ;;  %v556_v0 = vsel %vm547_vm1, %v2065_v59, %v1657_v34  ;;  %v573_v49 = vsel %vm547_vm1, %v396_v37, %v1661_v35  ;;  %v557_v8 = vsel %vm547_vm1, %v2075_v63, %v1662_v42 }
  0xa4   : > { %v1665_v41 = vpop.permute.xlu0 %1664  ;;  %v1670_v27 = vpop.permute.xlu1 %1669  ;;  %v383_v59 = vsub.f32 %v2165_v47, %v2162_v46  ;;  %v384_v63 = vsub.f32 %v2175_v56, %v2168_v48  ;;  %v1825_v37 = vmov 0.0  }
  0xa5   : > { %737 = vmatmul.mubr.f32.gmra.mrb[8].mxu0 %v552_v45  ;;  %v1666_v39 = vunpack.i.l.bf16 %v1665_v41  ;;  %v1667_v51 = vunpack.i.h.bf16 %v1665_v41  ;;  %v1671_v57 = vunpack.i.l.bf16 %v1670_v27  ;;  %v1672_v43 = vunpack.i.h.bf16 %v1670_v27 }
  0xa6   : > { %741 = vmatprep.mubr.f32.mxu0 %v569_v15  ;;  %v399_v29 = vand.u32 2147483647, %v383_v59  ;;  %v400_v33 = vand.u32 2147483647, %v384_v63  ;;  %v1826_v41 = vmov 0  }
  0xa7   : > { %v574_v58 = vsel %vm547_vm1, %v397_v50, %v1666_v39  ;;  %v558_v26 = vsel %vm547_vm1, %v2095_v7, %v1667_v51  ;;  %v575_v2 = vsel %vm547_vm1, %v398_v61, %v1671_v57  ;;  %v559_v47 = vsel %vm547_vm1, %v2112_v14, %v1672_v43  ;;  %1693 = vset.pattern.permute.xlu0 %v1826_v41  ;;  %v2382_v39 = vld [vmem:[%s2473_s5] ss:$0 sm:$0xff] }
  0xa8   : > { %v1675_v62 = vpop.permute.xlu0 %1674  ;;  %v1680_v3 = vpop.permute.xlu1 %1679  ;;  %v385_v7 = vsub.f32 %v2205_v11, %v2202_v10  ;;  %v386_v14 = vsub.f32 %v2221_v20, %v2212_v16  ;;  %1042 = vperm.xlu0 %1693, %v1039_v52  }
  0xa9   : > { %742 = vmatmul.mubr.f32.gmra.mrb[10].mxu0 %v553_v53  ;;  %v1676_v1 = vunpack.i.l.bf16 %v1675_v62  ;;  %v1677_v4 = vunpack.i.h.bf16 %v1675_v62  ;;  %v1681_v5 = vunpack.i.l.bf16 %v1680_v3  ;;  %v1682_v12 = vunpack.i.h.bf16 %v1680_v3 }
  0xaa   : > { %746 = vmatprep.mubr.f32.mxu0 %v570_v22  ;;  %v401_v15 = vand.u32 2147483647, %v385_v7  ;;  %v402_v53 = vand.u32 2147483647, %v386_v14 }
  0xab   : > { %v576_v6 = vsel %vm547_vm1, %v399_v29, %v1676_v1  ;;  %v560_v56 = vsel %vm547_vm1, %v2162_v46, %v1677_v4  ;;  %v577_v13 = vsel %vm547_vm1, %v400_v33, %v1681_v5  ;;  %v561_v11 = vsel %vm547_vm1, %v2168_v48, %v1682_v12 }
  0xac   : > { %v1685_v9 = vpop.permute.xlu0 %1684  ;;  %v1690_v17 = vpop.permute.xlu1 %1689  ;;  %v1823_v48 = vmov 0.0|0.0  }
  0xad   : > { %747 = vmatmul.mubr.f32.gmra.mrb[12].mxu0 %v554_v55  ;;  %v1686_v45 = vunpack.i.l.bf16 %v1685_v9  ;;  %v1687_v38 = vunpack.i.h.bf16 %v1685_v9  ;;  %v1691_v18 = vunpack.i.l.bf16 %v1690_v17  ;;  %v1692_v46 = vunpack.i.h.bf16 %v1690_v17  ;;  %1545 = vmatprep.subr.bf16.mxu0 %v1823_v48 }
  0xae   : > { %751 = vmatprep.mubr.f32.mxu0 %v571_v30 }
  0xaf   : > { %v578_v19 = vsel %vm547_vm1, %v401_v15, %v1686_v45  ;;  %v562_v21 = vsel %vm547_vm1, %v2202_v10, %v1687_v38  ;;  %v579_v22 = vsel %vm547_vm1, %v402_v53, %v1691_v18  ;;  %v563_v20 = vsel %vm547_vm1, %v2212_v16, %v1692_v46 }
  0xb1   : > { %752 = vmatmul.mubr.f32.gmra.mrb[14].mxu0 %v555_v60 }
  0xb2   : > { %756 = vmatprep.mubr.f32.mxu0 %v572_v36 }
  0xb5   : > { %757 = vmatmul.mubr.f32.gmra.mrb[16].mxu0 %v556_v0 }
  0xb6   : > { %761 = vmatprep.mubr.f32.mxu0 %v573_v49 }
  0xb9   : > { %762 = vmatmul.mubr.f32.gmra.mrb[18].mxu0 %v557_v8 }
  0xba   : > { %766 = vmatprep.mubr.f32.mxu0 %v574_v58 }
  0xbd   : > { %767 = vmatmul.mubr.f32.gmra.mrb[20].mxu0 %v558_v26 }
  0xbe   : > { %771 = vmatprep.mubr.f32.mxu0 %v575_v2 }
  0xc1   : > { %772 = vmatmul.mubr.f32.gmra.mrb[22].mxu0 %v559_v47 }
  0xc2   : > { %776 = vmatprep.mubr.f32.mxu0 %v576_v6 }
  0xc5   : > { %777 = vmatmul.mubr.f32.gmra.mrb[24].mxu0 %v560_v56 }
  0xc6   : > { %781 = vmatprep.mubr.f32.mxu0 %v577_v13 }
  0xc9   : > { %782 = vmatmul.mubr.f32.gmra.mrb[26].mxu0 %v561_v11 }
  0xca   : > { %786 = vmatprep.mubr.f32.mxu0 %v578_v19 }
  0xcd   : > { %787 = vmatmul.mubr.f32.gmra.mrb[28].mxu0 %v562_v21 }
  0xce   : > { %791 = vmatprep.mubr.f32.mxu0 %v579_v22 }
  0xd1   : > { %792 = vmatmul.mubr.f32.gmra.mrb[30].mxu0 %v563_v20 }
  0xd2   : > { %1478 = vmatprep.mubr.msk.f32.mxu0 %vm1824_vm2, %v1825_v37 }
 0x106   : > { %v1424_v23 = vpop.f32.mrb[0].mxu1 }
 0x107   : > { %v863_v40 = vpop.f32.mrb[1].mxu1 }
 0x10a   : > { %v1427_v24 = vpop.f32.mrb[2].mxu1 }
 0x10b   : > { %v873_v25 = vpop.f32.mrb[3].mxu1 }
 0x10e   : > { %v2354_v55 = vpop.f32.mrb[4].mxu1 }
 0x10f   : > { %v883_v28 = vpop.f32.mrb[5].mxu1 }
 0x112   : > { %v2356_v30 = vpop.f32.mrb[6].mxu1 }
 0x113   : > { %v2358_v10 = vpop.f32.mrb[7].mxu1 }
 0x116   : > { %v2360_v32 = vpop.f32.mrb[8].mxu1 }
 0x117   : > { %v2362_v44 = vpop.f32.mrb[9].mxu1 }
 0x11a   : > { %v2364_v16 = vpop.f32.mrb[10].mxu1 }
 0x11b   : > { %v2366_v31 = vpop.f32.mrb[11].mxu1 }
 0x11e   : > { %v2368_v34 = vpop.f32.mrb[12].mxu1 }
 0x11f   : > { %v2370_v60 = vpop.f32.mrb[13].mxu1 }
 0x122   : > { %v2372_v35 = vpop.f32.mrb[14].mxu1 }
 0x123   : > { %v2374_v36 = vpop.f32.mrb[15].mxu1 }
 0x168   : > { %v1293_v42 = vpop.f32.mrb[0].mxu0 }
 0x169   : > { %v1294_v0 = vpop.f32.mrb[1].mxu0 }
 0x16a   : > { %v1295_v49 = vadd.f32 %v1294_v0, %v1293_v42 }
 0x16c   : > { %v1296_v50 = vpop.f32.mrb[2].mxu0  ;;  %v719_v54 = vadd.f32 %v1295_v49, %v2382_v39 }
 0x16d   : > { %v1297_v27 = vpop.f32.mrb[3].mxu0 }
 0x16e   : > { %v1298_v51 = vadd.f32 %v1297_v27, %v1296_v50  ;;  %v864_v8 = vadd.f32 %v863_v40, %v719_v54 }
 0x170   : > { %v724_v57 = vadd.f32 %v1298_v51, %v2382_v39  ;;  %v1241_v58 = vmul.f32 -1.442695, %v864_v8  ;;  %v1299_v61 = vpop.f32.mrb[4].mxu0 }
 0x171   : > { %v1300_v59 = vpop.f32.mrb[5].mxu0 }
 0x172   : > { %v869_v62 = vadd.f32 %v1424_v23, %v724_v57  ;;  %1694 = vpow2.f32 %v1241_v58  ;;  %v1301_v43 = vadd.f32 %v1300_v59, %v1299_v61 }
 0x174   : > { %v1242_v26 = vmul.f32 -1.442695, %v869_v62  ;;  %v1302_v1 = vpop.f32.mrb[6].mxu0  ;;  %v729_v2 = vadd.f32 %v1301_v43, %v2382_v39 }
 0x175   : > { %v1303_v29 = vpop.f32.mrb[7].mxu0 }
 0x176   : > { %1696 = vpow2.f32 %v1242_v26  ;;  %v1304_v63 = vadd.f32 %v1303_v29, %v1302_v1  ;;  %v874_v3 = vadd.f32 %v873_v25, %v729_v2 }
 0x178   : > { %v734_v4 = vadd.f32 %v1304_v63, %v2382_v39  ;;  %v1243_v47 = vmul.f32 -1.442695, %v874_v3  ;;  %v1305_v5 = vpop.f32.mrb[8].mxu0 }
 0x179   : > { %v1306_v6 = vpop.f32.mrb[9].mxu0 }
 0x17a   : > { %v879_v33 = vadd.f32 %v1427_v24, %v734_v4  ;;  %1698 = vpow2.f32 %v1243_v47  ;;  %v1307_v7 = vadd.f32 %v1306_v6, %v1305_v5 }
 0x17c   : > { %v1695_v9 = vpop.eup %1694  ;;  %v1244_v12 = vmul.f32 -1.442695, %v879_v33  ;;  %v1308_v56 = vpop.f32.mrb[10].mxu0  ;;  %v739_v45 = vadd.f32 %v1307_v7, %v2382_v39 }
 0x17d   : > { %v990_v13 = vadd.f32 1.0, %v1695_v9  ;;  %v1309_v15 = vpop.f32.mrb[11].mxu0 }
 0x17e   : > { %1700 = vpow2.f32 %v1244_v12  ;;  %v1310_v14 = vadd.f32 %v1309_v15, %v1308_v56  ;;  %v884_v17 = vadd.f32 %v883_v28, %v739_v45 }
 0x17f   : > { %1702 = vrcp.f32 %v990_v13 }
 0x180   : > { %v1697_v38 = vpop.eup %1696  ;;  %v744_v11 = vadd.f32 %v1310_v14, %v2382_v39  ;;  %v1245_v18 = vmul.f32 -1.442695, %v884_v17  ;;  %v1311_v19 = vpop.f32.mrb[12].mxu0 }
 0x181   : > { %v991_v53 = vadd.f32 1.0, %v1697_v38  ;;  %v1312_v46 = vpop.f32.mrb[13].mxu0 }
 0x182   : > { %v889_v21 = vadd.f32 %v2354_v55, %v744_v11  ;;  %1704 = vpow2.f32 %v1245_v18  ;;  %v1313_v22 = vadd.f32 %v1312_v46, %v1311_v19 }
 0x183   : > { %1706 = vrcp.f32 %v991_v53 }
 0x184   : > { %v1699_v20 = vpop.eup %1698  ;;  %v1246_v23 = vmul.f32 -1.442695, %v889_v21  ;;  %v1314_v40 = vpop.f32.mrb[14].mxu0  ;;  %v749_v24 = vadd.f32 %v1313_v22, %v2382_v39 }
 0x185   : > { %v992_v25 = vadd.f32 1.0, %v1699_v20  ;;  %v1315_v28 = vpop.f32.mrb[15].mxu0 }
 0x186   : > { %1708 = vpow2.f32 %v1246_v23  ;;  %v1316_v37 = vadd.f32 %v1315_v28, %v1314_v40  ;;  %v894_v52 = vadd.f32 %v2358_v10, %v749_v24 }
 0x187   : > { %1710 = vrcp.f32 %v992_v25 }
 0x188   : > { %v1701_v41 = vpop.eup %1700  ;;  %v754_v42 = vadd.f32 %v1316_v37, %v2382_v39  ;;  %v1247_v0 = vmul.f32 -1.442695, %v894_v52  ;;  %v1317_v49 = vpop.f32.mrb[16].mxu0 }
 0x189   : > { %v993_v55 = vadd.f32 1.0, %v1701_v41  ;;  %v1318_v50 = vpop.f32.mrb[17].mxu0  ;;  %v1703_v51 = vpop.eup %1702 }
 0x18a   : > { %v899_v54 = vadd.f32 %v2356_v30, %v754_v42  ;;  %1712 = vpow2.f32 %v1247_v0  ;;  %v1319_v27 = vadd.f32 %v1318_v50, %v1317_v49 }
 0x18b   : > { %1714 = vrcp.f32 %v993_v55 }
 0x18c   : > { %v1705_v8 = vpop.eup %1704  ;;  %v1248_v57 = vmul.f32 -1.442695, %v899_v54  ;;  %v1320_v58 = vpop.f32.mrb[18].mxu0  ;;  %v759_v61 = vadd.f32 %v1319_v27, %v2382_v39 }
 0x18d   : > { %v1707_v10 = vpop.eup %1706  ;;  %v994_v59 = vadd.f32 1.0, %v1705_v8  ;;  %v1321_v62 = vpop.f32.mrb[19].mxu0 }
 0x18e   : > { %1716 = vpow2.f32 %v1248_v57  ;;  %v1322_v43 = vadd.f32 %v1321_v62, %v1320_v58  ;;  %v904_v26 = vadd.f32 %v2362_v44, %v759_v61  ;;  %v1546_v1 = vpack.c.bf16 %v1707_v10, %v1703_v51 }
 0x18f   : > { %1718 = vrcp.f32 %v994_v59 }
 0x190   : > { %v1709_v2 = vpop.eup %1708  ;;  %v764_v30 = vadd.f32 %v1322_v43, %v2382_v39  ;;  %v1249_v29 = vmul.f32 -1.442695, %v904_v26  ;;  %v1323_v63 = vpop.f32.mrb[20].mxu0  ;;  %1547 = vmatpush3.bf16.xpose.msra.mxu0 %v1546_v1 }
 0x191   : > { %v995_v3 = vadd.f32 1.0, %v1709_v2  ;;  %v1324_v4 = vpop.f32.mrb[21].mxu0  ;;  %1548 = vmatprep.subr.bf16.mxu0 %v1823_v48  ;;  %v1711_v6 = vpop.eup %1710 }
 0x192   : > { %v909_v47 = vadd.f32 %v2360_v32, %v764_v30  ;;  %1720 = vpow2.f32 %v1249_v29  ;;  %v1325_v5 = vadd.f32 %v1324_v4, %v1323_v63 }
 0x193   : > { %1722 = vrcp.f32 %v995_v3 }
 0x194   : > { %v1713_v33 = vpop.eup %1712  ;;  %v1250_v44 = vmul.f32 -1.442695, %v909_v47  ;;  %v1326_v7 = vpop.f32.mrb[22].mxu0  ;;  %v769_v9 = vadd.f32 %v1325_v5, %v2382_v39 }
 0x195   : > { %v1715_v12 = vpop.eup %1714  ;;  %v996_v56 = vadd.f32 1.0, %v1713_v33  ;;  %v1327_v45 = vpop.f32.mrb[23].mxu0 }
 0x196   : > { %1724 = vpow2.f32 %v1250_v44  ;;  %v1328_v13 = vadd.f32 %v1327_v45, %v1326_v7  ;;  %v914_v15 = vadd.f32 %v2366_v31, %v769_v9  ;;  %v1549_v14 = vpack.c.bf16 %v1715_v12, %v1711_v6 }
 0x197   : > { %1726 = vrcp.f32 %v996_v56 }
 0x198   : > { %v1717_v17 = vpop.eup %1716  ;;  %v774_v32 = vadd.f32 %v1328_v13, %v2382_v39  ;;  %v1251_v38 = vmul.f32 -1.442695, %v914_v15  ;;  %v1329_v11 = vpop.f32.mrb[24].mxu0  ;;  %1550 = vmatpush3.bf16.xpose.msra.mxu0 %v1549_v14 }
 0x199   : > { %v997_v18 = vadd.f32 1.0, %v1717_v17  ;;  %v1330_v19 = vpop.f32.mrb[25].mxu0  ;;  %1551 = vmatprep.subr.bf16.mxu0 %v1823_v48  ;;  %v1719_v21 = vpop.eup %1718 }
 0x19a   : > { %v919_v53 = vadd.f32 %v2364_v16, %v774_v32  ;;  %1728 = vpow2.f32 %v1251_v38  ;;  %v1331_v46 = vadd.f32 %v1330_v19, %v1329_v11  ;;  %v1038_v32 = vld [vmem:[%s2472_s4] sm:$0xff]  ;;  %v1043_v38 = vpop.permute.xlu0 %1042 }
 0x19b   : > { %1730 = vrcp.f32 %v997_v18 }
 0x19c   : > { %v1721_v22 = vpop.eup %1720  ;;  %v1252_v31 = vmul.f32 -1.442695, %v919_v53  ;;  %v1332_v20 = vpop.f32.mrb[26].mxu0  ;;  %v779_v23 = vadd.f32 %v1331_v46, %v2382_v39 }
 0x19d   : > { %v1723_v40 = vpop.eup %1722  ;;  %v998_v24 = vadd.f32 1.0, %v1721_v22  ;;  %v1333_v25 = vpop.f32.mrb[27].mxu0 }
 0x19e   : > { %1732 = vpow2.f32 %v1252_v31  ;;  %v1334_v28 = vadd.f32 %v1333_v25, %v1332_v20  ;;  %v924_v37 = vadd.f32 %v2370_v60, %v779_v23  ;;  %v1552_v52 = vpack.c.bf16 %v1723_v40, %v1719_v21 }
 0x19f   : > { %1734 = vrcp.f32 %v998_v24 }
 0x1a0   : > { %v1725_v41 = vpop.eup %1724  ;;  %v784_v16 = vadd.f32 %v1334_v28, %v2382_v39  ;;  %v1253_v42 = vmul.f32 -1.442695, %v924_v37  ;;  %v1335_v0 = vpop.f32.mrb[28].mxu0  ;;  %1553 = vmatpush3.bf16.xpose.msra.mxu0 %v1552_v52 }
 0x1a1   : > { %v999_v49 = vadd.f32 1.0, %v1725_v41  ;;  %v1336_v55 = vpop.f32.mrb[29].mxu0  ;;  %1554 = vmatprep.subr.bf16.mxu0 %v1823_v48  ;;  %v1727_v27 = vpop.eup %1726 }
 0x1a2   : > { %v929_v50 = vadd.f32 %v2368_v34, %v784_v16  ;;  %1736 = vpow2.f32 %v1253_v42  ;;  %v1337_v54 = vadd.f32 %v1336_v55, %v1335_v0 }
 0x1a3   : > { %1738 = vrcp.f32 %v999_v49 }
 0x1a4   : > { %v1729_v51 = vpop.eup %1728  ;;  %v1254_v60 = vmul.f32 -1.442695, %v929_v50  ;;  %v1338_v8 = vpop.f32.mrb[30].mxu0  ;;  %v789_v57 = vadd.f32 %v1337_v54, %v2382_v39 }
 0x1a5   : > { %v1731_v58 = vpop.eup %1730  ;;  %v1000_v61 = vadd.f32 1.0, %v1729_v51  ;;  %v1339_v10 = vpop.f32.mrb[31].mxu0 }
 0x1a6   : > { %1740 = vpow2.f32 %v1254_v60  ;;  %v1340_v59 = vadd.f32 %v1339_v10, %v1338_v8  ;;  %v934_v62 = vadd.f32 %v2374_v36, %v789_v57  ;;  %v1555_v43 = vpack.c.bf16 %v1731_v58, %v1727_v27 }
 0x1a7   : > { %1742 = vrcp.f32 %v1000_v61 }
 0x1a8   : > { %v1733_v26 = vpop.eup %1732  ;;  %v794_v34 = vadd.f32 %v1340_v59, %v2382_v39  ;;  %v1255_v1 = vmul.f32 -1.442695, %v934_v62  ;;  %1556 = vmatpush3.bf16.xpose.msra.mxu0 %v1555_v43 }
 0x1a9   : > { %v1001_v2 = vadd.f32 1.0, %v1733_v26  ;;  %1557 = vmatprep.subr.bf16.mxu0 %v1823_v48  ;;  %v1735_v29 = vpop.eup %1734 }
 0x1aa   : > { %v939_v30 = vadd.f32 %v2372_v35, %v794_v34  ;;  %1744 = vpow2.f32 %v1255_v1 }
 0x1ab   : > { %1746 = vrcp.f32 %v1001_v2 }
 0x1ac   : > { %v1737_v63 = vpop.eup %1736  ;;  %v1256_v3 = vmul.f32 -1.442695, %v939_v30 }
 0x1ad   : > { %v1739_v4 = vpop.eup %1738  ;;  %v1002_v47 = vadd.f32 1.0, %v1737_v63 }
 0x1ae   : > { %1748 = vpow2.f32 %v1256_v3  ;;  %v1558_v36 = vpack.c.bf16 %v1739_v4, %v1735_v29 }
 0x1af   : > { %1750 = vrcp.f32 %v1002_v47 }
 0x1b0   : > { %v1741_v5 = vpop.eup %1740  ;;  %1559 = vmatpush3.bf16.xpose.msra.mxu0 %v1558_v36 }
 0x1b1   : > { %v1003_v39 = vadd.f32 1.0, %v1741_v5  ;;  %1560 = vmatprep.subr.bf16.mxu0 %v1823_v48  ;;  %v1743_v6 = vpop.eup %1742 }
 0x1b3   : > { %1752 = vrcp.f32 %v1003_v39 }
 0x1b4   : > { %v1745_v33 = vpop.eup %1744 }
 0x1b5   : > { %v1747_v44 = vpop.eup %1746  ;;  %v1004_v35 = vadd.f32 1.0, %v1745_v33 }
 0x1b6   : > { %v1561_v7 = vpack.c.bf16 %v1747_v44, %v1743_v6 }
 0x1b7   : > { %1754 = vrcp.f32 %v1004_v35 }
 0x1b8   : > { %v1749_v9 = vpop.eup %1748  ;;  %1562 = vmatpush3.bf16.xpose.msra.mxu0 %v1561_v7 }
 0x1b9   : > { %v1005_v12 = vadd.f32 1.0, %v1749_v9  ;;  %1563 = vmatprep.subr.bf16.mxu0 %v1823_v48  ;;  %v1751_v56 = vpop.eup %1750 }
 0x1bb   : > { %1756 = vrcp.f32 %v1005_v12 }
 0x1bd   : > { %v1753_v45 = vpop.eup %1752 }
 0x1be   : > { %v1564_v13 = vpack.c.bf16 %v1753_v45, %v1751_v56 }
 0x1c0   : > { %1565 = vmatpush3.bf16.xpose.msra.mxu0 %v1564_v13 }
 0x1c1   : > { %1566 = vmatprep.subr.bf16.mxu0 %v1823_v48  ;;  %v1755_v15 = vpop.eup %1754 }
 0x1c5   : > { %v1757_v14 = vpop.eup %1756 }
 0x1c6   : > { %v1567_v17 = vpack.c.bf16 %v1757_v14, %v1755_v15 }
 0x1c8   : > { %1568 = vmatpush3.bf16.xpose.msra.mxu0 %v1567_v17 }
 0x1cf   : > { %1479 = vmatmul.mubr.f32.vlgmr.msra.gmra.mrb[32].mxu0 %v1038_v32 }
 0x2a2   : > { %v1111_v11 = vpop.f32.mrb[32].mxu0 }
 0x2a3   : > { %v1112_v18 = vadd.f32 %v1111_v11, %v1043_v38  ;;  %v1480_v19 = vpop.f32.mrb[33].mxu0 }
 0x2a5   : > { %1115 = vst [vmem:[%s304_s9] sm:$0xff] %v1112_v18 }
 0x2a6   : > { %1771 = shalt.err (!%p1768_p3)
}
 0x2a7   : > { %s1772_s16 = scalar_lea.hbm %s2426_s18, 128  ;;  %s1776_s23 = scalar_lea.hbm %s2475_s7, 256 }
 0x2a8   : > { %p1773_p4 = scmp.ne.s32.totalorder %s2426_s18, %s1772_s16  ;;  %p1777_p9 = scmp.lt.u32.totalorder %s2426_s18, %s2475_s7 }
 0x2a9   : > { %p1778_p10 = scmp.lt.u32.totalorder %s1776_s23, %s1772_s16  ;;  %p1780_p12 = scmp.lt.u32.totalorder %s1772_s16, %s2426_s18 }
 0x2aa   : > { %p1774_p7 = pnand %p1773_p4, %p1906_p5 }
 0x2ab   : > { %p1779_p11 = por %p1778_p10, %p1777_p9 }
 0x2ac   : > { %p1775_p8 = pneg %p1774_p7 }
 0x2ad   : > { %p1781_p13 = por %p1780_p12, %p1779_p11 }
 0x2af   : > { %p1782_p0 = pnand %p1781_p13, %p1775_p8 }
 0x2b1   : > { %1785 = shalt.err (!%p1782_p0)
}
 0x2b2   : > { %1569 = dma.vmem_to_hbm [thread:$0]  (%p1906_p5), %s2428_s15, 128, %s2426_s18, %s1117_s14  }
 0x2b3 PF: > { %p1575_p1 = scmp.ge.s32.totalorder %s1820_s27, 2  ;;  %s1142_s17 = sand.u32 1, %s1808_s24  }
 0x2b4   : > { %s1143_s29 = scalar_lea.sflag [#allocation3], %s1142_s17 }
 0x2b5   : > { %p1572_p2 = pnand %p1575_p1, %p1910_p6 }
 0x2b7   : > { %1803 = dma.done.wait (!%p1572_p2), %s1143_s29, 128  }
 0x2b8   : > { %1805 = vsyncadd (!%p1572_p2), %s1143_s29, 4294967168  ;;  %p17_p3 = scmp.ge.s32.totalorder %s1893_s30, 4   ;;  %s2481_s24 = smov %s1812_s25 }
 0x2b9   : > { %s2482_s25 = smov %s1816_s26  ;;  %s2483_s26 = smov %s1904_s10 }
 0x2ba   : > { %s2484_s27 = smov %s1893_s30  ;;  %19 = sbr.rel (!%p17_p3) target bundleno = 3 (0x3), region = 89 }
 0x2c1   :  { %1148 = vsyncpa [#allocation3], 1 }
 0x2c2   :  { %1150 = vsyncpa [#allocation3 + $0x1], 1 }

</bundles_post_ra>
